<compile_context>
chip_gen: v7x
topology: tpu7x:2x2x1
jax: 0.10.0
libtpu: 0.0.40
codegen_flags: <defaults>
</compile_context>

<pallas_src>
import functools

import jax
import jax.numpy as jnp
import numpy as np
from jax.experimental import pallas as pl
from jax.experimental.pallas import tpu as pltpu


# ----------------------------------------------------------------------------
# Generation-aware VMEM limit (leave headroom; fall back when not on TPU).
# ----------------------------------------------------------------------------
def _vmem_limit_bytes():
    try:
        cap = int(pltpu.get_tpu_info().vmem_capacity_bytes)
    except Exception:
        cap = 64 * 1024 * 1024
    return min((cap * 3) // 4, 100 * 1024 * 1024)


def _largest_divisor_tile(n, want, mult):
    """Largest t <= want with n % t == 0 and t % mult == 0; falls back to n."""
    t = (min(want, n) // mult) * mult
    while t >= mult:
        if n % t == 0:
            return t
        t -= mult
    return n


def _row_tile(n, want):
    """Row (sublane) tile: multiple of 8 dividing n.  For small n, split the
    rows in two so a 'parallel' grid axis has >= 2 steps (v7x megacore)."""
    if n <= want:
        t = _largest_divisor_tile(n, n // 2, 8)
        return t if t < n else n
    return _largest_divisor_tile(n, want, 8)


def _col_tile(n, want):
    """Column (lane) tile: multiple of 128 dividing n, else the full n."""
    if n >= want:
        return _largest_divisor_tile(n, want, 128)
    return n


# ----------------------------------------------------------------------------
# Training-mode kernel: relation = sigmoid((X @ X.T + gumbel) * (1/tau))
# Pure tile-local map (no resident accumulator) -> both grid axes "parallel".
# ----------------------------------------------------------------------------
def _agl_train_kernel(a_ref, bt_ref, g_ref, rel_ref, *, inv_tau, cast_bf16):
    a = a_ref[...]
    bt = bt_ref[...]
    if cast_bf16:
        a = a.astype(jnp.bfloat16)
        bt = bt.astype(jnp.bfloat16)
    # (tm, D) @ (D, tn) -> (tm, tn) on the MXU (B already pre-transposed).
    logits = jnp.dot(a, bt, preferred_element_type=jnp.float32)
    y = (logits + g_ref[...].astype(jnp.float32)) * inv_tau
    rel_ref[...] = jax.nn.sigmoid(y).astype(rel_ref.dtype)


def _prior_kl_from_edges(relation, prior_relation_index, eps):
    """mean(-prior_adj * log(rel + eps)) via the sparse edge list.  Exact when
    prior_adj is the 0/1 indicator of prior_relation_index (no dup edges)."""
    n = relation.shape[0]
    src = prior_relation_index[0]
    dst = prior_relation_index[1]
    edge_probs = relation[src, dst].astype(jnp.float32)
    return jnp.sum(-jnp.log(edge_probs + eps)) / (n * n)


def adaptive_graph_learning_train(feature_emb, prior_relation_index,
                                  gumbel_noise, *, tau=0.1, eps=1e-10,
                                  tm=1024, tn=1024,
                                  out_dtype=jnp.float32, matmul_bf16=False):
    """Training branch of forward: (relation, kl_loss)."""
    # TODO(synk): in-kernel Gumbel noise (pltpu.prng_seed/prng_random_bits)
    # would remove the N^2 gumbel HBM read, but those primitives have no
    # CPU/interpret lowering, so explicit noise is streamed in instead.
    N, D = feature_emb.shape
    tm = _row_tile(N, tm)
    tn = _col_tile(N, tn)
    grid = (N // tm, N // tn)
    inv_tau = float(1.0 / tau)
    feature_emb_t = feature_emb.T  # one-time (N,D)->(D,N); avoids per-tile transposes

    g_bytes = jnp.dtype(gumbel_noise.dtype).itemsize
    o_bytes = jnp.dtype(out_dtype).itemsize
    cost = pl.CostEstimate(
        flops=2 * N * N * D,
        transcendentals=N * N,                      # sigmoid ~ one exp / elem
        bytes_accessed=N * N * (g_bytes + o_bytes) + 2 * N * D * 4)

    kernel = functools.partial(_agl_train_kernel, inv_tau=inv_tau,
                               cast_bf16=matmul_bf16)
    rel = pl.pallas_call(
        kernel,
        out_shape=jax.ShapeDtypeStruct((N, N), out_dtype),
        grid_spec=pltpu.PrefetchScalarGridSpec(
            num_scalar_prefetch=0,
            grid=grid,
            in_specs=[
                pl.BlockSpec((tm, D), lambda i, j: (i, 0)),    # rows of X
                pl.BlockSpec((D, tn), lambda i, j: (0, j)),    # cols of X.T
                pl.BlockSpec((tm, tn), lambda i, j: (i, j)),   # gumbel tile
            ],
            out_specs=pl.BlockSpec((tm, tn), lambda i, j: (i, j)),
        ),
        compiler_params=pltpu.CompilerParams(
            dimension_semantics=("parallel", "parallel"),
            vmem_limit_bytes=_vmem_limit_bytes()),
        cost_estimate=cost,
    )(feature_emb, feature_emb_t, gumbel_noise)

    kl_loss = _prior_kl_from_edges(rel, prior_relation_index, eps)
    return rel, kl_loss


# ----------------------------------------------------------------------------
# Eval-mode kernel: gumbel_softmax(X @ X.T, hard=True) forward value.
# argmax(softmax((logits+g)/tau)) == argmax(logits+g) -> no softmax / tau.
# ----------------------------------------------------------------------------
def _agl_eval_kernel(a_ref, bt_ref, g_ref, rel_ref, *, n_cols, cast_bf16):
    a = a_ref[...]
    bt = bt_ref[...]
    if cast_bf16:
        a = a.astype(jnp.bfloat16)
        bt = bt.astype(jnp.bfloat16)
    logits = jnp.dot(a, bt, preferred_element_type=jnp.float32)   # (tm, N)
    y = logits + g_ref[...].astype(jnp.float32)
    row_max = jnp.max(y, axis=-1, keepdims=True)
    col = jax.lax.broadcasted_iota(jnp.int32, y.shape, 1)
    # First column index achieving the row max (matches torch .max(-1)).
    arg = jnp.min(jnp.where(y == row_max, col, n_cols), axis=-1, keepdims=True)
    rel_ref[...] = (col == arg).astype(rel_ref.dtype)


def adaptive_graph_learning_eval(feature_emb, gumbel_noise, *, tau=0.1,
                                 tm=256, out_dtype=jnp.float32,
                                 matmul_bf16=False):
    # tau is unused: the hard one-hot is invariant to the monotone softmax/tau.
    del tau
    N, D = feature_emb.shape
    tm = _row_tile(N, tm)
    feature_emb_t = feature_emb.T
    # TODO(synk): for very large N on v7x (64 MiB VMEM), tile the column axis
    # with a running max / first-index carried in scratch instead of (tm, N).
    g_bytes = jnp.dtype(gumbel_noise.dtype).itemsize
    o_bytes = jnp.dtype(out_dtype).itemsize
    cost = pl.CostEstimate(
        flops=2 * N * N * D,
        transcendentals=0,
        bytes_accessed=N * N * (g_bytes + o_bytes) + 2 * N * D * 4)

    kernel = functools.partial(_agl_eval_kernel, n_cols=N,
                               cast_bf16=matmul_bf16)
    rel = pl.pallas_call(
        kernel,
        out_shape=jax.ShapeDtypeStruct((N, N), out_dtype),
        grid_spec=pltpu.PrefetchScalarGridSpec(
            num_scalar_prefetch=0,
            grid=(N // tm,),
            in_specs=[
                pl.BlockSpec((tm, D), lambda i: (i, 0)),
                pl.BlockSpec((D, N), lambda i: (0, 0)),
                pl.BlockSpec((tm, N), lambda i: (i, 0)),
            ],
            out_specs=pl.BlockSpec((tm, N), lambda i: (i, 0)),
        ),
        compiler_params=pltpu.CompilerParams(
            dimension_semantics=("parallel",),
            vmem_limit_bytes=_vmem_limit_bytes()),
        cost_estimate=cost,
    )(feature_emb, feature_emb_t, gumbel_noise)
    return rel


# ----------------------------------------------------------------------------
# Gumbel noise (matches torch sample_gumbel exactly, seeded with JAX PRNG)
# ----------------------------------------------------------------------------
def sample_gumbel(key, shape, eps=1e-10, dtype=jnp.float32):
    u = jax.random.uniform(key, shape, jnp.float32)
    return (-jnp.log(eps - jnp.log(u + eps))).astype(dtype)


if __name__ == "__main__":
    key = jax.random.PRNGKey(0)
    k_emb, k_g1, k_g2 = jax.random.split(key, 3)

    N, D = 256, 32        # num_features (graph nodes), embedding dim
    tau = 0.1
    eps = 1e-10

    feature_emb = jax.random.normal(k_emb, (N, D), jnp.float32)

    # Deterministic prior_relation_index (ring graph), shape (2, E)
    src = jnp.arange(N, dtype=jnp.int32)
    dst = (src + 1) % N
    prior_relation_index = jnp.stack([src, dst])
    prior_adj = jnp.zeros((N, N), jnp.float32).at[src, dst].set(1.0)

    # ---- training branch of forward ----
    g_train = sample_gumbel(k_g1, (N, N), eps=eps)
    relation, kl_loss = adaptive_graph_learning_train(
        feature_emb, prior_relation_index, g_train, tau=tau, eps=eps)

    # bf16 relation output variant (halves the dominant N^2 HBM write stream)
    relation_bf16, kl_loss_bf16 = adaptive_graph_learning_train(
        feature_emb, prior_relation_index, g_train, tau=tau, eps=eps,
        out_dtype=jnp.bfloat16)

    # ---- eval branch of forward ----
    g_eval = sample_gumbel(k_g2, (N, N), eps=eps)
    relation_eval = adaptive_graph_learning_eval(feature_emb, g_eval, tau=tau)

    # torch.nonzero(relation).T — data-dependent output size; emulated with a
    # static upper bound of N*N and -1 padding.
    # TODO(synk): torch.nonzero has data-dependent shape; no static-shape Pallas equivalent.
    relation_index = jnp.stack(
        jnp.nonzero(relation > 0.0, size=N * N, fill_value=-1))

    jax.block_until_ready((relation, kl_loss, relation_bf16, kl_loss_bf16,
                           relation_eval, relation_index))

    # ---- reference checks against plain JAX ----
    logits_ref = jnp.dot(feature_emb, feature_emb.T,
                         precision=jax.lax.Precision.HIGHEST)
    rel_ref = jax.nn.sigmoid((logits_ref + g_train) / tau)
    kl_ref = jnp.mean(-prior_adj * jnp.log(rel_ref + eps))
    np.testing.assert_allclose(np.asarray(relation), np.asarray(rel_ref),
                               rtol=1e-4, atol=1e-4)
    np.testing.assert_allclose(float(kl_loss), float(kl_ref),
                               rtol=1e-4, atol=1e-5)

    # bf16 output: only quantization of the final sigmoid differs
    np.testing.assert_allclose(
        np.asarray(relation_bf16.astype(jnp.float32)), np.asarray(rel_ref),
        rtol=0.02, atol=0.01)
    assert np.isfinite(float(kl_loss_bf16))

    y_soft_ref = jax.nn.softmax((logits_ref + g_eval) / tau, axis=1)
    hard_ref = jax.nn.one_hot(jnp.argmax(y_soft_ref, axis=-1), N,
                              dtype=jnp.float32)
    np.testing.assert_allclose(np.asarray(relation_eval),
                               np.asarray(hard_ref), rtol=0, atol=0)

    print("KERNEL_OK")
</pallas_src>

<mosaic_0001>
module attributes {stable_mosaic.version = 11 : i64} {
  func.func @_agl_train_kernel(%arg0: i32, %arg1: i32, %arg2: memref<128x32xf32, #tpu.memory_space<vmem>>, %arg3: memref<32x256xf32, #tpu.memory_space<vmem>>, %arg4: memref<128x256xf32, #tpu.memory_space<vmem>>, %arg5: memref<128x256xf32, #tpu.memory_space<vmem>>) attributes {dimension_semantics = [#tpu.dimension_semantics<parallel>, #tpu.dimension_semantics<parallel>], iteration_bounds = array<i64: 2, 1>, scalar_prefetch = 0 : i64, scratch_operands = 0 : i64, tpu.core_type = #tpu.core_type<tc>, window_params = [{transform_indices = @transform_0, window_bounds = array<i64: 128, 32>}, {transform_indices = @transform_1, window_bounds = array<i64: 32, 256>}, {transform_indices = @transform_2, window_bounds = array<i64: 128, 256>}, {transform_indices = @transform_3, window_bounds = array<i64: 128, 256>}]} {
    %c0 = arith.constant 0 : index
    %c0_0 = arith.constant 0 : index
    %0 = vector.load %arg2[%c0, %c0_0] : memref<128x32xf32, #tpu.memory_space<vmem>>, vector<128x32xf32>
    %c0_1 = arith.constant 0 : index
    %c0_2 = arith.constant 0 : index
    %1 = vector.load %arg3[%c0_1, %c0_2] : memref<32x256xf32, #tpu.memory_space<vmem>>, vector<32x256xf32>
    %cst = arith.constant dense<0.000000e+00> : vector<128x256xf32>
    %2 = tpu.matmul %0, %1, %cst {dimension_numbers = #tpu.dot_dimension_numbers<[1], [0], [0], [1], [0, 0, 1, 1], [], []>} : vector<128x32xf32>, vector<32x256xf32>, vector<128x256xf32> -> vector<128x256xf32>
    %c0_3 = arith.constant 0 : index
    %c0_4 = arith.constant 0 : index
    %3 = vector.load %arg4[%c0_3, %c0_4] : memref<128x256xf32, #tpu.memory_space<vmem>>, vector<128x256xf32>
    %4 = arith.addf %2, %3 : vector<128x256xf32>
    %cst_5 = arith.constant 1.000000e+01 : f32
    %5 = vector.broadcast %cst_5 : f32 to vector<128x256xf32>
    %6 = arith.mulf %4, %5 : vector<128x256xf32>
    %7 = arith.negf %6 : vector<128x256xf32>
    %8 = math.exp %7 : vector<128x256xf32>
    %cst_6 = arith.constant 1.000000e+00 : f32
    %9 = vector.broadcast %cst_6 : f32 to vector<128x256xf32>
    %10 = arith.addf %9, %8 : vector<128x256xf32>
    %11 = arith.divf %9, %10 : vector<128x256xf32>
    %c0_7 = arith.constant 0 : index
    %c0_8 = arith.constant 0 : index
    %12 = vector.load %arg5[%c0_7, %c0_8] : memref<128x256xf32, #tpu.memory_space<vmem>>, vector<128x256xf32>
    tpu.vector_store %arg5[%c0_7, %c0_8], %11 {strides = array<i32>} : memref<128x256xf32, #tpu.memory_space<vmem>>, vector<128x256xf32>,
    return
  }
  func.func @transform_0(%arg0: i32, %arg1: i32) -> (i32, i32) {
    %c0_i32 = arith.constant 0 : i32
    %c0_i32_0 = arith.constant 0 : i32
    return %arg0, %c0_i32 : i32, i32
  }
  func.func @transform_1(%arg0: i32, %arg1: i32) -> (i32, i32) {
    %c0_i32 = arith.constant 0 : i32
    %c0_i32_0 = arith.constant 0 : i32
    return %c0_i32, %arg1 : i32, i32
  }
  func.func @transform_2(%arg0: i32, %arg1: i32) -> (i32, i32) {
    %c0_i32 = arith.constant 0 : i32
    return %arg0, %arg1 : i32, i32
  }
  func.func @transform_3(%arg0: i32, %arg1: i32) -> (i32, i32) {
    %c0_i32 = arith.constant 0 : i32
    return %arg0, %arg1 : i32, i32
  }
}

</mosaic_0001>

<bundles_post_ra>
// kernel: tpu_custom_call.1
= control target key start
LH: loop header
LB: loop body
LE: loop exit
PB: predicated region body
PF: predicated region fallthrough
CT: control target
= control target key end

     0   :  { %8 = vsyncpa [#allocation3], 0  ;;  %s1676_s0 = inlined_call_operand.vmem [shape: f32[256,32], index: 0, kind: input, shape index: {}]   ;;  %s1677_s1 = inlined_call_operand.vmem [shape: f32[32,256], index: 1, kind: input, shape index: {}]   ;;  %s1678_s2 = inlined_call_operand.hbm [shape: f32[256,256], index: 2, kind: input, shape index: {}]   ;;  %s1679_s3 = inlined_call_operand.hbm [shape: f32[256,256], index: 3, kind: output, shape index: {}]  }
   0x1   :  { %10 = vsyncpa [#allocation3 + $0x1], 0 }
   0x2   :  { %11 = vsyncpa [#allocation4], 0 }
   0x3   :  { %13 = vsyncpa [#allocation4 + $0x1], 0  ;;  %s1329_s12 = smov 0   ;;  %s1331_s13 = smov 0  }
   0x4   :  { %s1333_s14 = smov 0   ;;  %s1335_s15 = smov 0  }
   0x5   :  { %s1337_s16 = smov 0   ;;  %s1339_s17 = smov 0  }
   0x6 LB: > { %s909_s18 = sadd.s32 4294967295, %s1300_s17   ;;  %s910_s19 = sadd.s32 4294967294, %s1300_s17   ;;  %s1300_s17 = sphi %s1339_s17, %s19_s17   ;;  %s1296_s16 = sphi %s1337_s16, %s1694_s16   ;;  %s1292_s15 = sphi %s1335_s15, %s1693_s15   ;;  %s1288_s14 = sphi %s1333_s14, %s1692_s14   ;;  %s1284_s13 = sphi %s1331_s13, %s1691_s13   ;;  %s1280_s12 = sphi %s1329_s12, %s1690_s12  }
   0x7   : > { %s31_s20 = sadd.s32 1, %s1296_s16  ;;  %s92_s21 = sadd.s32 1, %s1288_s14 }
   0x8   : > { %p33_p0 = scmp.ge.s32.totalorder %s31_s20, 2  ;;  %p99_p1 = scmp.ne.s32.totalorder %s1288_s14, %s1284_s13 }
   0x9   : > { %p100_p2 = scmp.eq.s32.totalorder %s1300_s17, 0  ;;  %p105_p3 = scmp.ne.s32.totalorder %s1284_s13, %s1280_s12 }
   0xa   : > { %s1696_s20 = smov (%p33_p0, %s31_s20), 0  ;;  %p106_p5 = scmp.eq.s32.totalorder %s909_s18, 0 }
   0xb   : > { %p1370_p4 = por %p100_p2, %p99_p1  ;;  %s87_s23 = ssub.s32 %s1296_s16, %s1696_s20 }
   0xc   : > { %p131_p6 = scmp.eq.s32.totalorder %s909_s18, 1  ;;  %p90_p7 = scmp.eq.s32.totalorder %s87_s23, 0 }
   0xd   : > { %p1376_p8 = por %p106_p5, %p105_p3  ;;  %p137_p10 = scmp.eq.s32.totalorder %s910_s19, 1 }
   0xe   : > { %p1380_p9 = por %p131_p6, %p99_p1  ;;  %p1005_p13 = scmp.lt.s32.totalorder %s1300_s17, 2 }
   0xf   : > { %s1385_s26 = scalar_select %p90_p7, %s1288_s14, %s92_s21  }
  0x10   : > { %s1683_s25 = scalar_select %p1380_p9, 1, 0 }
  0x11   : > { %p1387_p11 = por %p137_p10, %p105_p3  ;;  %s175_s28 = sand.u32 1, %s1288_s14  }
  0x12   : > { %s914_s29 = sshll.u32 %s175_s28, 8  ;;  %s978_s30 = sshll.u32 %s1296_s16, 12 }
  0x13   : > { %s1684_s27 = scalar_select %p1387_p11, 1, 0 }
  0x14   : > { %s1398_s6 = scalar_lea.hbm %s1678_s2, %s978_s30  ;;  %s179_s7 = scalar_lea.vmem [#allocation2], %s914_s29 }
  0x15   : > { %s189_s8 = sshll.u32 %s179_s7, 4  ;;  %p1404_p0 = pnand %p1005_p13, %p1370_p4  ;;  %s1400_s8 = int_to_ptr.vmem [resolvable:$true] %s189_s8 }
  0x16   : > { %s1409_s10 = scalar_lea.sflag [#allocation3], %s175_s28  ;;  %s1188_s11 = scalar_lea.hbm %s1398_s6, 4096 }
  0x17   : > { %p1189_p2 = scmp.ne.s32.totalorder %s1398_s6, %s1188_s11  ;;  %p1190_p3 = pneg %p1404_p0 }
  0x18   : > { %s1193_s21 = scalar_lea.hbm %s1678_s2, 8192  ;;  %p1194_p4 = scmp.lt.u32.totalorder %s1398_s6, %s1678_s2 }
  0x19   : > { %p1191_p5 = pnand %p1190_p3, %p1189_p2  ;;  %p1195_p7 = scmp.lt.u32.totalorder %s1193_s21, %s1188_s11 }
  0x1a   : > { %p1197_p13 = scmp.lt.u32.totalorder %s1188_s11, %s1398_s6 }
  0x1b   : > { %p1192_p6 = pneg %p1191_p5  ;;  %p1196_p10 = por %p1195_p7, %p1194_p4 }
  0x1d   : > { %p1198_p12 = por %p1197_p13, %p1196_p10 }
  0x1f   : > { %p1199_p1 = pnand %p1198_p12, %p1192_p6 }
  0x21   : > { %1202 = shalt.err (!%p1199_p1)
}
  0x22   : > { %s1203_s28 = scalar_lea.vmem %s1400_s8, 4096  ;;  %s1302_s29 = smov [#allocation2]  }
  0x23   : > { %p1204_p2 = scmp.ne.s32.totalorder %s1400_s8, %s1203_s28  ;;  %s1208_s30 = sshll.u32 %s1302_s29, 4  ;;  %s1209_s30 = int_to_ptr.vmem [resolvable:$false] %s1208_s30 }
  0x24   : > { %s1210_s4 = scalar_lea.vmem %s1209_s30, 8192  ;;  %p1211_p9 = scmp.lt.s32.totalorder %s1400_s8, %s1209_s30 }
  0x25   : > { %p1206_p5 = pnand %p1204_p2, %p1190_p3  ;;  %p1212_p4 = scmp.lt.s32.totalorder %s1210_s4, %s1203_s28 }
  0x27   : > { %p1207_p11 = pneg %p1206_p5  ;;  %p1213_p7 = por %p1212_p4, %p1211_p9 }
  0x29   : > { %p1214_p10 = pnand %p1213_p7, %p1207_p11 }
  0x2b   : > { %1217 = shalt.err (!%p1214_p10)
}
  0x2c   : > { %s1303_s5 = smov 256   ;;  %s1304_s7 = smov 16  }
  0x2d   : > { %1000 = dma.hbm_to_vmem [thread:$0]  (!%p1404_p0), %s1398_s6, 4096, %s1400_s8, %s1409_s10, %s1303_s5, %s1303_s5, %s1304_s7  }
  0x2e   : > { %p197_p12 = scmp.lt.s32.totalorder %s1300_s17, 3  ;;  %p1686_p1 = scmp.ge.s32.totalorder %s1300_s17, 1 }
  0x30   : > { %p198_p3 = pnand %p1686_p1, %p197_p12 }
  0x31   : > { %s1441_s11 = sand.u32 (!%p198_p3), 1, %s1284_s13  }
  0x32   : > { %201 = sbr.rel (%p198_p3) target bundleno = 384 (0x180), region = 32  ;;  %s919_s18 = sshll.u32 (!%p198_p3), %s1441_s11, 8 }
  0x33   : > { %s204_s19 = scalar_lea.sflag (!%p198_p3), [#allocation3], %s1441_s11  ;;  %s1447_s21 = scalar_lea.vmem (!%p198_p3), [#allocation2], %s919_s18 }
  0x39   : > { %1271 = dma.done.wait (%p1376_p8), %s204_s19, 4096  }
  0x3a   : > { %1273 = vsyncadd (%p1376_p8), %s204_s19, 4294963200  ;;  %s921_s6 = sshll.u32 %s1292_s15, 4  ;;  %v1305_v0 = vmov 0.0   ;;  %v273_v1 = vld [vmem:[%s1677_s1 + $0x8] sm:$0xff]  ;;  %v275_v2 = vld [vmem:[%s1677_s1 + $0x18] sm:$0xff]  ;;  %vm312_vm0 = vcmask 261120  }
  0x3b   : > { %425 = vmatprep.mubr.f32.mxu0 %v1305_v0  ;;  %473 = vmatprep.mubr.f32.mxu1 %v1305_v0  ;;  %p241_p9 = scmp.lt.s32.totalorder %s921_s6, 31  ;;  %v272_v3 = vld [vmem:[%s1677_s1] sm:$0xff]  ;;  %v981_v4 = vpack.c.bf16 %v275_v2, %v273_v1  ;;  %v274_v5 = vld [vmem:[%s1677_s1 + $0x10] sm:$0xff]  ;;  %v277_v6 = vld [vmem:[%s1677_s1 + $0x28] sm:$0xff]  ;;  %p1687_p11 = scmp.ne.s32.totalorder %s1683_s25, 0 }
  0x3c   : > { %v279_v7 = vld [vmem:[%s1677_s1 + $0x38] sm:$0xff]  ;;  %v983_v8 = vpack.c.bf16 %v274_v5, %v272_v3  ;;  %v276_v10 = vld [vmem:[%s1677_s1 + $0x20] sm:$0xff]  ;;  %v278_v11 = vld [vmem:[%s1677_s1 + $0x30] sm:$0xff]  ;;  %s1306_s7 = smov [#allocation5]  }
  0x3d   : > { %s1698_s6 = smov (!%p241_p9, %s921_s6), 31  ;;  %v985_v9 = vpack.c.bf16 %v279_v7, %v277_v6  ;;  %982 = vmatprep.subr.bf16.mxu0 %v981_v4  ;;  %989 = vmatprep.subr.bf16.mxu1 %v981_v4  ;;  %v987_v12 = vpack.c.bf16 %v278_v11, %v276_v10  ;;  %v280_v29 = vld [vmem:[%s1447_s21] sm:$0xff]  ;;  %v281_v31 = vld [vmem:[%s1447_s21 + $0x8] sm:$0xff]  ;;  %v282_v41 = vld [vmem:[%s1447_s21 + $0x10] sm:$0xff]  ;;  %s1222_s19 = sshll.u32 %s1306_s7, 4  ;;  %s1223_s19 = int_to_ptr.vmem [resolvable:$false] %s1222_s19 }
  0x3e   : > { %s922_s22 = sshll.u32 %s1698_s6, 3  ;;  %984 = vmatpush1.bf16.msra.mxu0 %v983_v8  ;;  %991 = vmatpush1.bf16.msra.mxu1 %v983_v8  ;;  %v296_v30 = vld [vmem:[%s1447_s21 + $0x80] sm:$0xff]  ;;  %v297_v32 = vld [vmem:[%s1447_s21 + $0x88] sm:$0xff]  ;;  %v298_v42 = vld [vmem:[%s1447_s21 + $0x90] sm:$0xff]  ;;  %s1572_s6 = scalar_lea.vmem [#allocation5], %s919_s18 }
  0x3f   : > { %986 = vmatprep.subr.bf16.mxu0 %v985_v9  ;;  %990 = vmatprep.subr.bf16.mxu1 %v985_v9  ;;  %s1483_s28 = scalar_lea.vmem %s1676_s0, %s922_s22  ;;  %v283_v45 = vld [vmem:[%s1447_s21 + $0x18] sm:$0xff]  ;;  %v284_v61 = vld [vmem:[%s1447_s21 + $0x20] sm:$0xff]  ;;  %v285_v5 = vld [vmem:[%s1447_s21 + $0x28] sm:$0xff]  ;;  %s980_s18 = sshll.u32 %s1292_s15, 12 }
  0x40   : > { %v256_v13 = vld [vmem:[%s1483_s28] sm:$0xff]  ;;  %v257_v15 = vld [vmem:[%s1483_s28 + $0x8] sm:$0xff]  ;;  %v258_v17 = vld [vmem:[%s1483_s28 + $0x10] sm:$0xff]  ;;  %s1622_s4 = scalar_lea.hbm %s1679_s3, %s980_s18  ;;  %s779_s15 = scalar_lea.sflag [#allocation4], %s1441_s11 }
  0x41   : > { %v264_v14 = vld [vmem:[%s1483_s28 + $0x40] sm:$0xff]  ;;  %v265_v16 = vld [vmem:[%s1483_s28 + $0x48] sm:$0xff]  ;;  %v266_v18 = vld [vmem:[%s1483_s28 + $0x50] sm:$0xff]  ;;  %s1224_s8 = scalar_lea.vmem %s1223_s19, 8192 }
  0x42   : > { %988 = vmatpush1.bf16.msra.mxu0 %v987_v12  ;;  %992 = vmatpush1.bf16.msra.mxu1 %v987_v12  ;;  %v259_v19 = vld [vmem:[%s1483_s28 + $0x18] sm:$0xff]  ;;  %v260_v21 = vld [vmem:[%s1483_s28 + $0x20] sm:$0xff]  ;;  %v261_v23 = vld [vmem:[%s1483_s28 + $0x28] sm:$0xff] }
  0x43   : > { %v267_v20 = vld [vmem:[%s1483_s28 + $0x58] sm:$0xff]  ;;  %v268_v22 = vld [vmem:[%s1483_s28 + $0x60] sm:$0xff]  ;;  %v269_v24 = vld [vmem:[%s1483_s28 + $0x68] sm:$0xff] }
  0x44   : > { %v262_v25 = vld [vmem:[%s1483_s28 + $0x30] sm:$0xff]  ;;  %v263_v27 = vld [vmem:[%s1483_s28 + $0x38] sm:$0xff]  ;;  %v301_v6 = vld [vmem:[%s1447_s21 + $0xa8] sm:$0xff] }
  0x45   : > { %923 = vmatmul.mubr.msk.f32.vlgmr.msra.gmra.mrb[0].mxu0 %vm312_vm0, %v256_v13  ;;  %931 = vmatmul.mubr.msk.f32.vlgmr.msra.gmra.mrb[0].mxu1 %vm312_vm0, %v264_v14  ;;  %v270_v26 = vld [vmem:[%s1483_s28 + $0x70] sm:$0xff]  ;;  %v271_v28 = vld [vmem:[%s1483_s28 + $0x78] sm:$0xff] }
  0x46   : > { %431 = vmatprep.mubr.f32.mxu0 %v1305_v0  ;;  %479 = vmatprep.mubr.f32.mxu1 %v1305_v0  ;;  %v299_v46 = vld [vmem:[%s1447_s21 + $0x98] sm:$0xff] }
  0x49   : > { %924 = vmatmul.mubr.msk.f32.gmra.mrb[2].mxu0 %vm312_vm0, %v257_v15  ;;  %932 = vmatmul.mubr.msk.f32.gmra.mrb[2].mxu1 %vm312_vm0, %v265_v16 }
  0x4a   : > { %437 = vmatprep.mubr.f32.mxu0 %v1305_v0  ;;  %485 = vmatprep.mubr.f32.mxu1 %v1305_v0 }
  0x4d   : > { %925 = vmatmul.mubr.msk.f32.gmra.mrb[4].mxu0 %vm312_vm0, %v258_v17  ;;  %933 = vmatmul.mubr.msk.f32.gmra.mrb[4].mxu1 %vm312_vm0, %v266_v18 }
  0x4e   : > { %443 = vmatprep.mubr.f32.mxu0 %v1305_v0  ;;  %491 = vmatprep.mubr.f32.mxu1 %v1305_v0 }
  0x51   : > { %926 = vmatmul.mubr.msk.f32.gmra.mrb[6].mxu0 %vm312_vm0, %v259_v19  ;;  %934 = vmatmul.mubr.msk.f32.gmra.mrb[6].mxu1 %vm312_vm0, %v267_v20 }
  0x52   : > { %449 = vmatprep.mubr.f32.mxu0 %v1305_v0  ;;  %497 = vmatprep.mubr.f32.mxu1 %v1305_v0 }
  0x55   : > { %927 = vmatmul.mubr.msk.f32.gmra.mrb[8].mxu0 %vm312_vm0, %v260_v21  ;;  %935 = vmatmul.mubr.msk.f32.gmra.mrb[8].mxu1 %vm312_vm0, %v268_v22 }
  0x56   : > { %455 = vmatprep.mubr.f32.mxu0 %v1305_v0  ;;  %503 = vmatprep.mubr.f32.mxu1 %v1305_v0 }
  0x59   : > { %928 = vmatmul.mubr.msk.f32.gmra.mrb[10].mxu0 %vm312_vm0, %v261_v23  ;;  %936 = vmatmul.mubr.msk.f32.gmra.mrb[10].mxu1 %vm312_vm0, %v269_v24 }
  0x5a   : > { %461 = vmatprep.mubr.f32.mxu0 %v1305_v0  ;;  %509 = vmatprep.mubr.f32.mxu1 %v1305_v0 }
  0x5d   : > { %929 = vmatmul.mubr.msk.f32.gmra.mrb[12].mxu0 %vm312_vm0, %v262_v25  ;;  %937 = vmatmul.mubr.msk.f32.gmra.mrb[12].mxu1 %vm312_vm0, %v270_v26 }
  0x5e   : > { %467 = vmatprep.mubr.f32.mxu0 %v1305_v0  ;;  %515 = vmatprep.mubr.f32.mxu1 %v1305_v0  ;;  %v300_v0 = vld [vmem:[%s1447_s21 + $0xa0] sm:$0xff] }
  0x61   : > { %930 = vmatmul.mubr.msk.f32.gmra.mrb[14].mxu0 %vm312_vm0, %v263_v27  ;;  %938 = vmatmul.mubr.msk.f32.gmra.mrb[14].mxu1 %vm312_vm0, %v271_v28  ;;  %v286_v27 = vld [vmem:[%s1447_s21 + $0x30] sm:$0xff] }
 0x118   : > { %v427_v33 = vpop.f32.mrb[0].mxu0  ;;  %v475_v34 = vpop.f32.mrb[0].mxu1 }
 0x119   : > { %v428_v35 = vadd.f32 %v427_v33, %v280_v29  ;;  %v476_v36 = vadd.f32 %v475_v34, %v296_v30  ;;  %v429_v37 = vpop.f32.mrb[1].mxu0  ;;  %v477_v38 = vpop.f32.mrb[1].mxu1  ;;  %v302_v30 = vld [vmem:[%s1447_s21 + $0xb0] sm:$0xff] }
 0x11a   : > { %v430_v39 = vadd.f32 %v429_v37, %v281_v31  ;;  %v478_v40 = vadd.f32 %v477_v38, %v297_v32 }
 0x11b   : > { %v939_v43 = vmul.f32 -10.0, %v428_v35  ;;  %v955_v44 = vmul.f32 -10.0, %v476_v36  ;;  %v287_v35 = vld [vmem:[%s1447_s21 + $0x38] sm:$0xff] }
 0x11c   : > { %v940_v47 = vmul.f32 -10.0, %v430_v39  ;;  %v956_v48 = vmul.f32 -10.0, %v478_v40  ;;  %v433_v49 = vpop.f32.mrb[2].mxu0  ;;  %v481_v50 = vpop.f32.mrb[2].mxu1 }
 0x11d   : > { %v586_v51 = vmul.f32 1.442695, %v939_v43  ;;  %v618_v52 = vmul.f32 1.442695, %v955_v44  ;;  %v434_v53 = vadd.f32 %v433_v49, %v282_v41  ;;  %v482_v54 = vadd.f32 %v481_v50, %v298_v42  ;;  %v435_v55 = vpop.f32.mrb[3].mxu0  ;;  %v483_v56 = vpop.f32.mrb[3].mxu1 }
 0x11e   : > { %v588_v57 = vmul.f32 1.442695, %v940_v47  ;;  %v620_v58 = vmul.f32 1.442695, %v956_v48  ;;  %v436_v59 = vadd.f32 %v435_v55, %v283_v45  ;;  %v484_v60 = vadd.f32 %v483_v56, %v299_v46  ;;  %v303_v46 = vld [vmem:[%s1447_s21 + $0xb8] sm:$0xff] }
 0x11f   : > { %1060 = vpow2.f32 %v586_v51  ;;  %v941_v62 = vmul.f32 -10.0, %v434_v53  ;;  %v957_v63 = vmul.f32 -10.0, %v482_v54 }
 0x120   : > { %1062 = vpow2.f32 %v618_v52  ;;  %v942_v1 = vmul.f32 -10.0, %v436_v59  ;;  %v958_v2 = vmul.f32 -10.0, %v484_v60  ;;  %v439_v3 = vpop.f32.mrb[4].mxu0  ;;  %v487_v4 = vpop.f32.mrb[4].mxu1  ;;  %v288_v52 = vld [vmem:[%s1447_s21 + $0x40] sm:$0xff] }
 0x121   : > { %1064 = vpow2.f32 %v588_v57  ;;  %v590_v7 = vmul.f32 1.442695, %v941_v62  ;;  %v622_v8 = vmul.f32 1.442695, %v957_v63  ;;  %v440_v9 = vadd.f32 %v439_v3, %v284_v61  ;;  %v441_v10 = vpop.f32.mrb[5].mxu0  ;;  %v489_v11 = vpop.f32.mrb[5].mxu1 }
 0x122   : > { %1066 = vpow2.f32 %v620_v58  ;;  %v592_v12 = vmul.f32 1.442695, %v942_v1  ;;  %v624_v13 = vmul.f32 1.442695, %v958_v2  ;;  %v488_v14 = vadd.f32 %v487_v4, %v300_v0  ;;  %v304_v57 = vld [vmem:[%s1447_s21 + $0xc0] sm:$0xff]  ;;  %v289_v62 = vld [vmem:[%s1447_s21 + $0x48] sm:$0xff] }
 0x123   : > { %1068 = vpow2.f32 %v590_v7  ;;  %v943_v15 = vmul.f32 -10.0, %v440_v9  ;;  %v442_v16 = vadd.f32 %v441_v10, %v285_v5  ;;  %v490_v17 = vadd.f32 %v489_v11, %v301_v6  ;;  %v305_v3 = vld [vmem:[%s1447_s21 + $0xc8] sm:$0xff]  ;;  %v290_v10 = vld [vmem:[%s1447_s21 + $0x50] sm:$0xff] }
 0x124   : > { %1070 = vpow2.f32 %v622_v8  ;;  %v959_v18 = vmul.f32 -10.0, %v488_v14  ;;  %v445_v19 = vpop.f32.mrb[6].mxu0  ;;  %v493_v20 = vpop.f32.mrb[6].mxu1 }
 0x125   : > { %1072 = vpow2.f32 %v592_v12  ;;  %v594_v21 = vmul.f32 1.442695, %v943_v15  ;;  %v944_v22 = vmul.f32 -10.0, %v442_v16  ;;  %v960_v23 = vmul.f32 -10.0, %v490_v17  ;;  %v447_v24 = vpop.f32.mrb[7].mxu0  ;;  %v495_v25 = vpop.f32.mrb[7].mxu1 }
 0x126   : > { %1074 = vpow2.f32 %v624_v13  ;;  %v626_v26 = vmul.f32 1.442695, %v959_v18  ;;  %v446_v34 = vadd.f32 %v445_v19, %v286_v27  ;;  %v494_v40 = vadd.f32 %v493_v20, %v302_v30  ;;  %v306_v17 = vld [vmem:[%s1447_s21 + $0xd0] sm:$0xff]  ;;  %v307_v27 = vld [vmem:[%s1447_s21 + $0xd8] sm:$0xff] }
 0x127   : > { %1076 = vpow2.f32 %v594_v21  ;;  %v596_v28 = vmul.f32 1.442695, %v944_v22  ;;  %v628_v29 = vmul.f32 1.442695, %v960_v23  ;;  %v448_v45 = vadd.f32 %v447_v24, %v287_v35  ;;  %v291_v22 = vld [vmem:[%s1447_s21 + $0x58] sm:$0xff] }
 0x128   : > { %1078 = vpow2.f32 %v626_v26  ;;  %v451_v31 = vpop.f32.mrb[8].mxu0  ;;  %v499_v32 = vpop.f32.mrb[8].mxu1  ;;  %v945_v51 = vmul.f32 -10.0, %v446_v34  ;;  %v961_v56 = vmul.f32 -10.0, %v494_v40  ;;  %v496_v61 = vadd.f32 %v495_v25, %v303_v46 }
 0x129   : > { %v1061_v33 = vpop.eup %1060  ;;  %1080 = vpow2.f32 %v596_v28  ;;  %v453_v36 = vpop.f32.mrb[9].mxu0  ;;  %v946_v1 = vmul.f32 -10.0, %v448_v45  ;;  %v452_v2 = vadd.f32 %v451_v31, %v288_v52  ;;  %v500_v9 = vadd.f32 %v499_v32, %v304_v57 }
 0x12a   : > { %v501_v37 = vpop.f32.mrb[9].mxu1  ;;  %v1063_v38 = vpop.eup %1062  ;;  %v650_v39 = vadd.f32 1.0, %v1061_v33  ;;  %1082 = vpow2.f32 %v628_v29  ;;  %v598_v8 = vmul.f32 1.442695, %v945_v51  ;;  %v630_v15 = vmul.f32 1.442695, %v961_v56 }
 0x12b   : > { %v1065_v41 = vpop.eup %1064  ;;  %v666_v42 = vadd.f32 1.0, %v1063_v38  ;;  %v454_v16 = vadd.f32 %v453_v36, %v289_v62  ;;  %v962_v20 = vmul.f32 -10.0, %v496_v61  ;;  %v502_v21 = vadd.f32 %v501_v37, %v305_v3  ;;  %v292_v33 = vld [vmem:[%s1447_s21 + $0x60] sm:$0xff] }
 0x12c   : > { %v1067_v43 = vpop.eup %1066  ;;  %1084 = vrcp.f32 %v650_v39  ;;  %v651_v44 = vadd.f32 1.0, %v1065_v41  ;;  %v457_v47 = vpop.f32.mrb[10].mxu0  ;;  %v947_v25 = vmul.f32 -10.0, %v452_v2  ;;  %v963_v31 = vmul.f32 -10.0, %v500_v9  ;;  %v308_v9 = vld [vmem:[%s1447_s21 + $0xe0] sm:$0xff] }
 0x12d   : > { %v505_v48 = vpop.f32.mrb[10].mxu1  ;;  %v1069_v49 = vpop.eup %1068  ;;  %1086 = vrcp.f32 %v666_v42  ;;  %v667_v50 = vadd.f32 1.0, %v1067_v43  ;;  %v458_v26 = vadd.f32 %v457_v47, %v290_v10  ;;  %v600_v37 = vmul.f32 1.442695, %v946_v1 }
 0x12e   : > { %v459_v53 = vpop.f32.mrb[11].mxu0  ;;  %v1071_v54 = vpop.eup %1070  ;;  %1088 = vrcp.f32 %v651_v44  ;;  %v652_v55 = vadd.f32 1.0, %v1069_v49  ;;  %v506_v32 = vadd.f32 %v505_v48, %v306_v17  ;;  %v948_v38 = vmul.f32 -10.0, %v454_v16  ;;  %v309_v17 = vld [vmem:[%s1447_s21 + $0xe8] sm:$0xff] }
 0x12f   : > { %v507_v58 = vpop.f32.mrb[11].mxu1  ;;  %v1073_v59 = vpop.eup %1072  ;;  %1090 = vrcp.f32 %v667_v50  ;;  %v668_v60 = vadd.f32 1.0, %v1071_v54  ;;  %v460_v39 = vadd.f32 %v459_v53, %v291_v22  ;;  %v632_v41 = vmul.f32 1.442695, %v962_v20 }
 0x130   : > { %v1075_v63 = vpop.eup %1074  ;;  %1092 = vrcp.f32 %v652_v55  ;;  %v653_v0 = vadd.f32 1.0, %v1073_v59  ;;  %v463_v4 = vpop.f32.mrb[12].mxu0  ;;  %v964_v42 = vmul.f32 -10.0, %v502_v21  ;;  %v508_v43 = vadd.f32 %v507_v58, %v307_v27  ;;  %v294_v21 = vld [vmem:[%s1447_s21 + $0x70] sm:$0xff] }
 0x131   : > { %v1551_v5 = vpop.f32.mrb[12].mxu1  ;;  %v1077_v6 = vpop.eup %1076  ;;  %1094 = vrcp.f32 %v668_v60  ;;  %v669_v7 = vadd.f32 1.0, %v1075_v63  ;;  %v602_v45 = vmul.f32 1.442695, %v947_v25  ;;  %v949_v46 = vmul.f32 -10.0, %v458_v26  ;;  %v310_v25 = vld [vmem:[%s1447_s21 + $0xf0] sm:$0xff] }
 0x132   : > { %v1554_v11 = vpop.f32.mrb[13].mxu0  ;;  %v1556_v12 = vpop.f32.mrb[13].mxu1  ;;  %1096 = vrcp.f32 %v653_v0  ;;  %v654_v14 = vadd.f32 1.0, %v1077_v6  ;;  %v464_v47 = vadd.f32 %v463_v4, %v292_v33  ;;  %v634_v49 = vmul.f32 1.442695, %v963_v31  ;;  %v295_v31 = vld [vmem:[%s1447_s21 + $0x78] sm:$0xff] }
 0x133   : > { %v1079_v13 = vpop.eup %1078  ;;  %1098 = vrcp.f32 %v669_v7  ;;  %v965_v50 = vmul.f32 -10.0, %v506_v32  ;;  %v604_v52 = vmul.f32 1.442695, %v948_v38  ;;  %v950_v53 = vmul.f32 -10.0, %v460_v39 }
 0x134   : > { %v1081_v18 = vpop.eup %1080  ;;  %v670_v19 = vadd.f32 1.0, %v1079_v13  ;;  %1100 = vrcp.f32 %v654_v14  ;;  %v1561_v28 = vpop.f32.mrb[14].mxu0  ;;  %v636_v55 = vmul.f32 1.442695, %v964_v42  ;;  %v966_v56 = vmul.f32 -10.0, %v508_v43  ;;  %v293_v14 = vld [vmem:[%s1447_s21 + $0x68] sm:$0xff] }
 0x135   : > { %v1083_v23 = vpop.eup %1082  ;;  %v655_v24 = vadd.f32 1.0, %v1081_v18  ;;  %v1563_v29 = vpop.f32.mrb[14].mxu1  ;;  %v606_v58 = vmul.f32 1.442695, %v949_v46  ;;  %v951_v59 = vmul.f32 -10.0, %v464_v47  ;;  %v512_v20 = vadd.f32 %v1551_v5, %v308_v9  ;;  %v311_v5 = vld [vmem:[%s1447_s21 + $0xf8] sm:$0xff] }
 0x136   : > { %1102 = vrcp.f32 %v670_v19  ;;  %v671_v30 = vadd.f32 1.0, %v1083_v23  ;;  %v1566_v34 = vpop.f32.mrb[15].mxu0  ;;  %v1568_v35 = vpop.f32.mrb[15].mxu1  ;;  %v638_v61 = vmul.f32 1.442695, %v965_v50  ;;  %s795_s21 = sshll.u32 %s1572_s6, 4  ;;  %s1624_s21 = int_to_ptr.vmem [resolvable:$true] %s795_s21 }
 0x137   : > { %v1085_v36 = vpop.eup %1084  ;;  %1104 = vrcp.f32 %v655_v24  ;;  %v608_v63 = vmul.f32 1.442695, %v950_v53  ;;  %v640_v1 = vmul.f32 1.442695, %v966_v56  ;;  %v610_v3 = vmul.f32 1.442695, %v951_v59  ;;  %p1225_p13 = scmp.lt.s32.totalorder %s1624_s21, %s1223_s19 }
 0x138   : > { %v1087_v40 = vpop.eup %1086  ;;  %746 = vst [vmem:[%s1572_s6] sm:$0xff] %v1085_v36  ;;  %1106 = vrcp.f32 %v671_v30  ;;  %v466_v24 = vadd.f32 %v1554_v11, %v293_v14  ;;  %v514_v30 = vadd.f32 %v1556_v12, %v309_v17  ;;  %v470_v36 = vadd.f32 %v1561_v28, %v294_v21  ;;  %s1218_s5 = scalar_lea.vmem %s1624_s21, 4096 }
 0x139   : > { %v1089_v44 = vpop.eup %1088  ;;  %762 = vst [vmem:[%s1572_s6 + $0x80] sm:$0xff] %v1087_v40  ;;  %1108 = vpow2.f32 %v598_v8  ;;  %v967_v39 = vmul.f32 -10.0, %v512_v20  ;;  %v518_v40 = vadd.f32 %v1563_v29, %v310_v25  ;;  %v472_v43 = vadd.f32 %v1566_v34, %v295_v31  ;;  %p1219_p8 = scmp.ne.s32.totalorder %s1624_s21, %s1218_s5  ;;  %p1226_p2 = scmp.lt.s32.totalorder %s1224_s8, %s1218_s5 }
 0x13a   : > { %v1091_v48 = vpop.eup %1090  ;;  %747 = vst [vmem:[%s1572_s6 + $0x8] sm:$0xff] %v1089_v44  ;;  %1110 = vpow2.f32 %v630_v15  ;;  %v952_v42 = vmul.f32 -10.0, %v466_v24  ;;  %v520_v46 = vadd.f32 %v1568_v35, %v311_v5 }
 0x13b   : > { %v1093_v51 = vpop.eup %1092  ;;  %763 = vst [vmem:[%s1572_s6 + $0x88] sm:$0xff] %v1091_v48  ;;  %1112 = vpow2.f32 %v600_v37  ;;  %v953_v48 = vmul.f32 -10.0, %v470_v36  ;;  %v642_v50 = vmul.f32 1.442695, %v967_v39  ;;  %p1220_p0 = pnand %p1219_p8, %p1687_p11  ;;  %p1227_p5 = por %p1226_p2, %p1225_p13 }
 0x13c   : > { %v1095_v54 = vpop.eup %1094  ;;  %748 = vst [vmem:[%s1572_s6 + $0x10] sm:$0xff] %v1093_v51  ;;  %1114 = vpow2.f32 %v632_v41  ;;  %v969_v51 = vmul.f32 -10.0, %v518_v40  ;;  %v612_v53 = vmul.f32 1.442695, %v952_v42  ;;  %v970_v56 = vmul.f32 -10.0, %v520_v46 }
 0x13d   : > { %v1097_v57 = vpop.eup %1096  ;;  %764 = vst [vmem:[%s1572_s6 + $0x90] sm:$0xff] %v1095_v54  ;;  %1116 = vpow2.f32 %v602_v45  ;;  %v968_v45 = vmul.f32 -10.0, %v514_v30  ;;  %v954_v54 = vmul.f32 -10.0, %v472_v43  ;;  %p1221_p6 = pneg %p1220_p0 }
 0x13e   : > { %v1099_v60 = vpop.eup %1098  ;;  %749 = vst [vmem:[%s1572_s6 + $0x18] sm:$0xff] %v1097_v57  ;;  %1118 = vpow2.f32 %v634_v49 }
 0x13f   : > { %v1101_v62 = vpop.eup %1100  ;;  %765 = vst [vmem:[%s1572_s6 + $0x98] sm:$0xff] %v1099_v60  ;;  %1120 = vpow2.f32 %v604_v52  ;;  %v644_v35 = vmul.f32 1.442695, %v968_v45  ;;  %v646_v60 = vmul.f32 1.442695, %v969_v51  ;;  %p1228_p4 = pnand %p1227_p5, %p1221_p6 }
 0x140   : > { %v1103_v0 = vpop.eup %1102  ;;  %750 = vst [vmem:[%s1572_s6 + $0x20] sm:$0xff] %v1101_v62  ;;  %1122 = vpow2.f32 %v636_v55  ;;  %v616_v62 = vmul.f32 1.442695, %v954_v54 }
 0x141   : > { %v1105_v2 = vpop.eup %1104  ;;  %766 = vst [vmem:[%s1572_s6 + $0xa0] sm:$0xff] %v1103_v0  ;;  %1124 = vpow2.f32 %v606_v58  ;;  %v614_v58 = vmul.f32 1.442695, %v953_v48  ;;  %v648_v0 = vmul.f32 1.442695, %v970_v56 }
 0x142   : > { %v1107_v4 = vpop.eup %1106  ;;  %751 = vst [vmem:[%s1572_s6 + $0x28] sm:$0xff] %v1105_v2  ;;  %1126 = vpow2.f32 %v638_v61 }
 0x143   : > { %v1109_v6 = vpop.eup %1108  ;;  %767 = vst [vmem:[%s1572_s6 + $0xa8] sm:$0xff] %v1107_v4  ;;  %1128 = vpow2.f32 %v608_v63 }
 0x144   : > { %v1111_v7 = vpop.eup %1110  ;;  %v656_v8 = vadd.f32 1.0, %v1109_v6  ;;  %1130 = vpow2.f32 %v640_v1 }
 0x145   : > { %v1113_v10 = vpop.eup %1112  ;;  %v672_v13 = vadd.f32 1.0, %v1111_v7  ;;  %1132 = vpow2.f32 %v610_v3 }
 0x146   : > { %v1115_v15 = vpop.eup %1114  ;;  %1134 = vrcp.f32 %v656_v8  ;;  %v657_v16 = vadd.f32 1.0, %v1113_v10 }
 0x147   : > { %v1117_v18 = vpop.eup %1116  ;;  %1136 = vrcp.f32 %v672_v13  ;;  %v673_v19 = vadd.f32 1.0, %v1115_v15 }
 0x148   : > { %v1119_v22 = vpop.eup %1118  ;;  %1138 = vrcp.f32 %v657_v16  ;;  %v658_v23 = vadd.f32 1.0, %v1117_v18 }
 0x149   : > { %v1121_v26 = vpop.eup %1120  ;;  %1140 = vrcp.f32 %v673_v19  ;;  %v674_v27 = vadd.f32 1.0, %v1119_v22 }
 0x14a   : > { %v1123_v32 = vpop.eup %1122  ;;  %1142 = vrcp.f32 %v658_v23  ;;  %v659_v33 = vadd.f32 1.0, %v1121_v26 }
 0x14b   : > { %v1125_v37 = vpop.eup %1124  ;;  %1144 = vrcp.f32 %v674_v27  ;;  %v675_v38 = vadd.f32 1.0, %v1123_v32 }
 0x14c   : > { %v1127_v11 = vpop.eup %1126  ;;  %1146 = vrcp.f32 %v659_v33  ;;  %v660_v41 = vadd.f32 1.0, %v1125_v37 }
 0x14d   : > { %v1129_v12 = vpop.eup %1128  ;;  %1148 = vrcp.f32 %v675_v38  ;;  %v676_v44 = vadd.f32 1.0, %v1127_v11 }
 0x14e   : > { %v1131_v28 = vpop.eup %1130  ;;  %1150 = vrcp.f32 %v660_v41  ;;  %v661_v47 = vadd.f32 1.0, %v1129_v12 }
 0x14f   : > { %v1133_v49 = vpop.eup %1132  ;;  %1152 = vrcp.f32 %v676_v44  ;;  %v677_v29 = vadd.f32 1.0, %v1131_v28 }
 0x150   : > { %v1135_v52 = vpop.eup %1134  ;;  %1154 = vrcp.f32 %v661_v47  ;;  %v662_v34 = vadd.f32 1.0, %v1133_v49 }
 0x151   : > { %v1137_v55 = vpop.eup %1136  ;;  %752 = vst [vmem:[%s1572_s6 + $0x30] sm:$0xff] %v1135_v52  ;;  %1156 = vrcp.f32 %v677_v29 }
 0x152   : > { %v1139_v57 = vpop.eup %1138  ;;  %768 = vst [vmem:[%s1572_s6 + $0xb0] sm:$0xff] %v1137_v55  ;;  %1158 = vrcp.f32 %v662_v34 }
 0x153   : > { %v1141_v59 = vpop.eup %1140  ;;  %753 = vst [vmem:[%s1572_s6 + $0x38] sm:$0xff] %v1139_v57  ;;  %1160 = vpow2.f32 %v642_v50 }
 0x154   : > { %v1143_v61 = vpop.eup %1142  ;;  %769 = vst [vmem:[%s1572_s6 + $0xb8] sm:$0xff] %v1141_v59  ;;  %1162 = vpow2.f32 %v612_v53 }
 0x155   : > { %v1145_v63 = vpop.eup %1144  ;;  %754 = vst [vmem:[%s1572_s6 + $0x40] sm:$0xff] %v1143_v61  ;;  %1164 = vpow2.f32 %v644_v35 }
 0x156   : > { %v1147_v1 = vpop.eup %1146  ;;  %770 = vst [vmem:[%s1572_s6 + $0xc0] sm:$0xff] %v1145_v63  ;;  %1166 = vpow2.f32 %v614_v58 }
 0x157   : > { %v1149_v2 = vpop.eup %1148  ;;  %755 = vst [vmem:[%s1572_s6 + $0x48] sm:$0xff] %v1147_v1  ;;  %1168 = vpow2.f32 %v646_v60 }
 0x158   : > { %v1151_v3 = vpop.eup %1150  ;;  %771 = vst [vmem:[%s1572_s6 + $0xc8] sm:$0xff] %v1149_v2  ;;  %1170 = vpow2.f32 %v616_v62 }
 0x159   : > { %v1153_v4 = vpop.eup %1152  ;;  %756 = vst [vmem:[%s1572_s6 + $0x50] sm:$0xff] %v1151_v3  ;;  %1172 = vpow2.f32 %v648_v0 }
 0x15a   : > { %v1155_v6 = vpop.eup %1154  ;;  %772 = vst [vmem:[%s1572_s6 + $0xd0] sm:$0xff] %v1153_v4 }
 0x15b   : > { %v1157_v7 = vpop.eup %1156  ;;  %757 = vst [vmem:[%s1572_s6 + $0x58] sm:$0xff] %v1155_v6 }
 0x15c   : > { %v1159_v8 = vpop.eup %1158  ;;  %773 = vst [vmem:[%s1572_s6 + $0xd8] sm:$0xff] %v1157_v7 }
 0x15d   : > { %v1161_v9 = vpop.eup %1160  ;;  %758 = vst [vmem:[%s1572_s6 + $0x60] sm:$0xff] %v1159_v8 }
 0x15e   : > { %v1163_v10 = vpop.eup %1162  ;;  %v678_v13 = vadd.f32 1.0, %v1161_v9 }
 0x15f   : > { %v1165_v14 = vpop.eup %1164  ;;  %v663_v15 = vadd.f32 1.0, %v1163_v10 }
 0x160   : > { %v1167_v16 = vpop.eup %1166  ;;  %1174 = vrcp.f32 %v678_v13  ;;  %v679_v17 = vadd.f32 1.0, %v1165_v14 }
 0x161   : > { %v1169_v18 = vpop.eup %1168  ;;  %1176 = vrcp.f32 %v663_v15  ;;  %v664_v19 = vadd.f32 1.0, %v1167_v16 }
 0x162   : > { %v1171_v20 = vpop.eup %1170  ;;  %1178 = vrcp.f32 %v679_v17  ;;  %v680_v21 = vadd.f32 1.0, %v1169_v18 }
 0x163   : > { %v1173_v22 = vpop.eup %1172  ;;  %1180 = vrcp.f32 %v664_v19  ;;  %v665_v23 = vadd.f32 1.0, %v1171_v20 }
 0x164   : > { %1182 = vrcp.f32 %v680_v21  ;;  %v681_v24 = vadd.f32 1.0, %v1173_v22 }
 0x165   : > { %1184 = vrcp.f32 %v665_v23 }
 0x166   : > { %1186 = vrcp.f32 %v681_v24 }
 0x16a   : > { %v1175_v25 = vpop.eup %1174 }
 0x16b   : > { %v1177_v26 = vpop.eup %1176  ;;  %774 = vst [vmem:[%s1572_s6 + $0xe0] sm:$0xff] %v1175_v25 }
 0x16c   : > { %v1179_v27 = vpop.eup %1178  ;;  %759 = vst [vmem:[%s1572_s6 + $0x68] sm:$0xff] %v1177_v26 }
 0x16d   : > { %v1181_v30 = vpop.eup %1180  ;;  %775 = vst [vmem:[%s1572_s6 + $0xe8] sm:$0xff] %v1179_v27 }
 0x16e   : > { %v1183_v31 = vpop.eup %1182  ;;  %760 = vst [vmem:[%s1572_s6 + $0x70] sm:$0xff] %v1181_v30 }
 0x16f   : > { %v1185_v32 = vpop.eup %1184  ;;  %776 = vst [vmem:[%s1572_s6 + $0xf0] sm:$0xff] %v1183_v31 }
 0x170   : > { %v1187_v33 = vpop.eup %1186  ;;  %761 = vst [vmem:[%s1572_s6 + $0x78] sm:$0xff] %v1185_v32 }
 0x171   : > { %777 = vst [vmem:[%s1572_s6 + $0xf8] sm:$0xff] %v1187_v33 }
 0x172   : > { %1231 = shalt.err (!%p1228_p4)
}
 0x173   : > { %s1232_s9 = scalar_lea.hbm %s1622_s4, 4096  ;;  %s1236_s23 = scalar_lea.hbm %s1679_s3, 8192 }
 0x174   : > { %p1233_p7 = scmp.ne.s32.totalorder %s1622_s4, %s1232_s9  ;;  %p1237_p1 = scmp.lt.u32.totalorder %s1622_s4, %s1679_s3 }
 0x175   : > { %p1238_p3 = scmp.lt.u32.totalorder %s1236_s23, %s1232_s9  ;;  %p1240_p8 = scmp.lt.u32.totalorder %s1232_s9, %s1622_s4 }
 0x176   : > { %p1234_p10 = pnand %p1233_p7, %p1687_p11 }
 0x177   : > { %p1239_p9 = por %p1238_p3, %p1237_p1 }
 0x178   : > { %p1235_p12 = pneg %p1234_p10 }
 0x179   : > { %p1241_p0 = por %p1240_p8, %p1239_p9 }
 0x17b   : > { %p1242_p6 = pnand %p1241_p0, %p1235_p12 }
 0x17d   : > { %1245 = shalt.err (!%p1242_p6)
}
 0x17e   : > { %s1307_s6 = smov 256   ;;  %s1308_s18 = smov 16  }
 0x17f   : > { %995 = dma.vmem_to_hbm [thread:$0]  (%p1687_p11), %s1624_s21, 4096, %s1622_s4, %s779_s15, %s1307_s6, %s1307_s6, %s1308_s18  }
 0x180 PF: > { %s810_s29 = sand.u32 1, %s1280_s12   ;;  %p1688_p13 = scmp.ne.s32.totalorder %s1684_s27, 0 }
 0x181   : > { %p1689_p2 = scmp.ge.s32.totalorder %s1300_s17, 2  ;;  %s811_s30 = scalar_lea.sflag [#allocation4], %s810_s29 }
 0x183   : > { %p1002_p5 = pnand %p1689_p2, %p1688_p13 }
 0x185   : > { %1275 = dma.done.wait (!%p1002_p5), %s811_s30, 4096  }
 0x186   : > { %1277 = vsyncadd (!%p1002_p5), %s811_s30, 4294963200  ;;  %s19_s17 = sadd.s32 1, %s1300_s17   ;;  %s1690_s12 = smov %s1284_s13 }
 0x187   : > { %p16_p4 = scmp.ge.s32.totalorder %s19_s17, 4   ;;  %s1691_s13 = smov %s1288_s14 }
 0x188   : > { %s1692_s14 = smov %s1385_s26  ;;  %s1693_s15 = smov %s1296_s16 }
 0x189   : > { %s1694_s16 = smov %s1696_s20  ;;  %18 = sbr.rel (!%p16_p4) target bundleno = 6 (0x6), region = 83 }
 0x190   :  { %816 = vsyncpa [#allocation3], 1 }
 0x191   :  { %818 = vsyncpa [#allocation3 + $0x1], 1 }
 0x192   :  { %819 = vsyncpa [#allocation4], 1 }
 0x193   :  { %821 = vsyncpa [#allocation4 + $0x1], 1 }

</bundles_post_ra>
